<compile_context>
chip_gen: v7x
topology: tpu7x:2x2x1
jax: 0.10.0
libtpu: 0.0.40
codegen_flags: <defaults>
</compile_context>

<pallas_src>
import functools

import jax
import jax.numpy as jnp
from jax.experimental import pallas as pl
from jax.experimental.pallas import tpu as pltpu

ALPHA = 0.25
GAMMA = 2.0


def _per_row_focal(logits_ref, targets_ref, *, gamma, tile_n, n_valid):
    """Per-row focal loss, shape (TILE_N, 1) f32; rows >= n_valid forced to 0."""
    logits = logits_ref[...].astype(jnp.float32)                   # (T, C)
    tgt = targets_ref[...]                                         # (T, 1) i32

    # Numerically stable log-sum-exp.  `logits - m` is consumed only by the
    # exp inside the reduction, so it needn't persist as a full-tile array.
    m = jnp.max(logits, axis=-1, keepdims=True)                    # (T, 1)
    sumexp = jnp.sum(jnp.exp(logits - m), axis=-1, keepdims=True)  # (T, 1)

    # Gather the target-class logit straight from the raw logits via iota
    # compare + masked sum (no dynamic gather on TPU).
    cls_ids = jax.lax.broadcasted_iota(jnp.int32, logits.shape, 1)
    tgt_logit = jnp.sum(jnp.where(cls_ids == tgt, logits, 0.0),
                        axis=-1, keepdims=True)                    # (T, 1)

    ce = (m - tgt_logit) + jnp.log(sumexp)                         # (T, 1)
    pt = jnp.exp(-ce)
    om = 1.0 - pt
    if gamma == 2.0:
        mod = om * om                      # plain VPU multiply, no pow/EUP
    elif gamma == 1.0:
        mod = om
    elif gamma == 0.0:
        mod = jnp.ones_like(om)
    else:
        mod = jnp.power(jnp.maximum(om, 0.0), gamma)
    focal = mod * ce                                               # (T, 1)

    # Mask rows past the true batch size (padded tail tile).  Select-after-
    # compute keeps NaN/Inf from garbage rows out of the result.
    row_ids = (pl.program_id(0) * tile_n
               + jax.lax.broadcasted_iota(jnp.int32, focal.shape, 0))
    return jnp.where(row_ids < n_valid, focal, 0.0)


def _focal_partial_sum_kernel(logits_ref, targets_ref, out_ref, *,
                              gamma, scale, tile_n, n_valid):
    focal = _per_row_focal(logits_ref, targets_ref,
                           gamma=gamma, tile_n=tile_n, n_valid=n_valid)
    partial = jnp.sum(focal) * scale                               # scalar
    # Lane-dense (8, 128) output block: partial sum at [0, 0], zeros elsewhere.
    r = jax.lax.broadcasted_iota(jnp.int32, (8, 128), 0)
    c = jax.lax.broadcasted_iota(jnp.int32, (8, 128), 1)
    out_ref[...] = jnp.where((r == 0) & (c == 0), partial, 0.0)


def _focal_per_row_kernel(logits_ref, targets_ref, out_ref, *,
                          gamma, scale, tile_n, n_valid):
    focal = _per_row_focal(logits_ref, targets_ref,
                           gamma=gamma, tile_n=tile_n, n_valid=n_valid)
    # Lane-dense (1, TILE_N) row: one full-width store per tile instead of
    # TILE_N one-lane-wide masked stores.
    out_ref[...] = (focal * scale).reshape(1, -1)


def _vmem_limit_bytes():
    """Scoped-VMEM limit: half physical VMEM, capped at 64 MiB.

    v5e/v6e (128 MiB physical) -> 64 MiB; v7x (64 MiB physical) -> 32 MiB.
    Falls back to 32 MiB if the hardware query is unavailable.
    """
    try:
        cap = int(getattr(pltpu.get_tpu_info(), "vmem_capacity_bytes", 0)) or None
    except Exception:
        cap = None
    if cap is None:
        cap = 64 * 1024 * 1024
    return min(cap // 2, 64 * 1024 * 1024)


def _sanitize_tile(tile, n):
    if n < 8:
        return n                    # block equals full batch dim (allowed)
    tile = max(8, min(tile, n))
    return (tile // 8) * 8


def _choose_tile_n(n, c, itemsize, vmem_limit):
    # Real per-row VMEM footprint, not just the raw logits block:
    #   * double-buffered input logits block (HBM dtype):      2 * C * itemsize
    #   * peak live (T, C) f32 temporaries in the body
    #     (f32 upcast, exp, one-hot select, headroom):         4 * C * 4
    #   * targets block lane-padded to (T, 128) i32, x2 bufs:  2 * 512
    #   * per-row (T, 1) columns + output block:               ~512
    per_row = 2 * c * itemsize + 4 * c * 4 + 2 * 512 + 512
    budget = (vmem_limit * 3) // 4          # headroom for Mosaic scratch
    tile = min(budget // max(1, per_row), 2048)
    # Keep >= 4 grid steps when N allows so the "parallel" axis can shard
    # across both v7x TensorCores (step overhead stays amortised on v5e/v6e).
    if n >= 4 * 8:
        tile = min(tile, max(8, (n // 4 // 8) * 8))
    return _sanitize_tile(tile, n)


def focal_loss(logits, targets, *, alpha=ALPHA, gamma=GAMMA,
               reduction="mean", tile_n=None):
    """Matches FocalLoss.forward: CE(reduction='none') -> (1-pt)^gamma * ce ->
    reduction ('mean'/'sum'/'none') -> scale by alpha (if alpha != 0).

    logits: (N, C) float (f32 or bf16 — bf16 halves HBM traffic and is upcast
    to f32 inside the kernel); targets: (N,) integer class indices.
    """
    if reduction not in ("mean", "sum", "none"):
        raise ValueError(f"Unsupported reduction: {reduction}")
    n, c = logits.shape
    itemsize = jnp.dtype(logits.dtype).itemsize
    vmem_limit = _vmem_limit_bytes()
    if tile_n is None:
        tile_n = _choose_tile_n(n, c, itemsize, vmem_limit)
    else:
        tile_n = _sanitize_tile(int(tile_n), n)
    nb = pl.cdiv(n, tile_n)

    alpha_eff = float(alpha) if alpha != 0 else 1.0   # torch skips *alpha at 0
    targets2d = targets.astype(jnp.int32).reshape(n, 1)

    in_specs = [
        pl.BlockSpec((tile_n, c), lambda i: (i, 0)),
        pl.BlockSpec((tile_n, 1), lambda i: (i, 0)),
    ]
    compiler_params = pltpu.CompilerParams(
        dimension_semantics=("parallel",),
        vmem_limit_bytes=vmem_limit,
    )

    if reduction == "none":
        cost = pl.CostEstimate(
            flops=6 * n * c,
            transcendentals=n * c + 2 * n,
            bytes_accessed=n * c * itemsize + n * 4 + nb * tile_n * 4,
        )
        out = pl.pallas_call(
            functools.partial(_focal_per_row_kernel, gamma=gamma,
                              scale=alpha_eff, tile_n=tile_n, n_valid=n),
            out_shape=jax.ShapeDtypeStruct((nb, tile_n), jnp.float32),
            grid=(nb,),
            in_specs=in_specs,
            out_specs=pl.BlockSpec((1, tile_n), lambda i: (i, 0)),
            compiler_params=compiler_params,
            cost_estimate=cost,
        )(logits, targets2d)
        return out.reshape(-1)[:n]

    scale = alpha_eff / n if reduction == "mean" else alpha_eff
    cost = pl.CostEstimate(
        flops=6 * n * c,
        transcendentals=n * c + 2 * n,
        bytes_accessed=n * c * itemsize + n * 4 + nb * 8 * 128 * 4,
    )
    partials = pl.pallas_call(
        functools.partial(_focal_partial_sum_kernel, gamma=gamma,
                          scale=scale, tile_n=tile_n, n_valid=n),
        out_shape=jax.ShapeDtypeStruct((nb * 8, 128), jnp.float32),
        grid=(nb,),
        in_specs=in_specs,
        out_specs=pl.BlockSpec((8, 128), lambda i: (i, 0)),
        compiler_params=compiler_params,
        cost_estimate=cost,
    )(logits, targets2d)
    return jnp.sum(partials)


def _focal_loss_ref(logits, targets, *, alpha=ALPHA, gamma=GAMMA,
                    reduction="mean"):
    # Pure-JAX reference mirroring nn.CrossEntropyLoss(reduction='none') + focal.
    logp = jax.nn.log_softmax(logits.astype(jnp.float32), axis=-1)
    ce = -jnp.take_along_axis(logp, targets[:, None].astype(jnp.int32),
                              axis=-1)[:, 0]
    pt = jnp.exp(-ce)
    focal = (1.0 - pt) ** gamma * ce
    if reduction == "mean":
        focal = jnp.mean(focal)
    elif reduction == "sum":
        focal = jnp.sum(focal)
    if alpha != 0:
        focal = focal * alpha
    return focal


if __name__ == "__main__":
    key = jax.random.PRNGKey(0)
    k1, k2 = jax.random.split(key)
    N, C = 20, 32  # N % tile_n != 0 exercises the masked tail block
    logits = jax.random.normal(k1, (N, C), dtype=jnp.float32)
    targets = jax.random.randint(k2, (N,), 0, C, dtype=jnp.int32)

    ref = _focal_loss_ref(logits, targets)

    # mean reduction, multi-block grid (3 blocks of 8 rows, masked tail).
    out = focal_loss(logits, targets, tile_n=8)
    jax.block_until_ready(out)
    assert jnp.allclose(out, ref, atol=1e-5, rtol=1e-5), (out, ref)

    # mean reduction, auto-sized tile (2 blocks of 16 rows, masked tail).
    out2 = focal_loss(logits, targets)
    jax.block_until_ready(out2)
    assert jnp.allclose(out2, ref, atol=1e-5, rtol=1e-5), (out2, ref)

    # 'sum' and 'none' reductions.
    out_sum = focal_loss(logits, targets, reduction="sum", tile_n=8)
    ref_sum = _focal_loss_ref(logits, targets, reduction="sum")
    assert jnp.allclose(out_sum, ref_sum, atol=1e-4, rtol=1e-5), (out_sum, ref_sum)

    out_none = focal_loss(logits, targets, reduction="none", tile_n=8)
    jax.block_until_ready(out_none)
    ref_none = _focal_loss_ref(logits, targets, reduction="none")
    assert jnp.allclose(out_none, ref_none, atol=1e-5, rtol=1e-5), (out_none, ref_none)

    # bf16 logits: kernel is HBM-bound, so narrow inputs halve traffic.
    out_bf16 = focal_loss(logits.astype(jnp.bfloat16), targets)
    jax.block_until_ready(out_bf16)
    assert jnp.allclose(out_bf16, ref, atol=5e-2, rtol=5e-2), (out_bf16, ref)

    print("KERNEL_OK")
</pallas_src>

<mosaic_0001>
module attributes {stable_mosaic.version = 11 : i64} {
  func.func @_focal_partial_sum_kernel(%arg0: i32, %arg1: memref<8x32xf32, #tpu.memory_space<vmem>>, %arg2: memref<8x1xi32, #tpu.memory_space<vmem>>, %arg3: memref<8x128xf32, #tpu.memory_space<vmem>>) attributes {dimension_semantics = [#tpu.dimension_semantics<parallel>], iteration_bounds = array<i64: 3>, scalar_prefetch = 0 : i64, scratch_operands = 0 : i64, tpu.core_type = #tpu.core_type<tc>, window_params = [{transform_indices = @transform_0, window_bounds = array<i64: 8, 32>}, {transform_indices = @transform_1, window_bounds = array<i64: 8, 1>}, {transform_indices = @transform_2, window_bounds = array<i64: 8, 128>}]} {
    %c0 = arith.constant 0 : index
    %c0_0 = arith.constant 0 : index
    %0 = vector.load %arg1[%c0, %c0_0] : memref<8x32xf32, #tpu.memory_space<vmem>>, vector<8x32xf32>
    %c0_1 = arith.constant 0 : index
    %c0_2 = arith.constant 0 : index
    %1 = vector.load %arg2[%c0_1, %c0_2] : memref<8x1xi32, #tpu.memory_space<vmem>>, vector<8x1xi32>
    %cst = arith.constant dense<0xFF800000> : vector<8xf32>
    %2 = vector.multi_reduction <maximumf>, %0, %cst [1] : vector<8x32xf32> to vector<8xf32>
    %3 = vector.shape_cast %2 : vector<8xf32> to vector<8x1xf32>
    %4 = vector.broadcast %3 : vector<8x1xf32> to vector<8x32xf32>
    %5 = arith.subf %0, %4 : vector<8x32xf32>
    %6 = math.exp %5 : vector<8x32xf32>
    %cst_3 = arith.constant dense<0.000000e+00> : vector<8xf32>
    %7 = vector.multi_reduction <add>, %6, %cst_3 [1] : vector<8x32xf32> to vector<8xf32>
    %8 = vector.shape_cast %7 : vector<8xf32> to vector<8x1xf32>
    %9 = tpu.iota {dimensions = array<i32: 1>} : vector<8x32xi32>
    %10 = vector.broadcast %1 : vector<8x1xi32> to vector<8x32xi32>
    %11 = arith.cmpi eq, %9, %10 : vector<8x32xi32>
    %cst_4 = arith.constant 0.000000e+00 : f32
    %12 = vector.broadcast %cst_4 : f32 to vector<8x32xf32>
    %13 = arith.select %11, %0, %12 : vector<8x32xi1>, vector<8x32xf32>
    %cst_5 = arith.constant dense<0.000000e+00> : vector<8xf32>
    %14 = vector.multi_reduction <add>, %13, %cst_5 [1] : vector<8x32xf32> to vector<8xf32>
    %15 = vector.shape_cast %14 : vector<8xf32> to vector<8x1xf32>
    %16 = arith.subf %3, %15 : vector<8x1xf32>
    %17 = math.log %8 : vector<8x1xf32>
    %18 = arith.addf %16, %17 : vector<8x1xf32>
    %cst_6 = arith.constant 0.000000e+00 : f32
    %19 = vector.broadcast %cst_6 : f32 to vector<8x1xf32>
    %20 = arith.subf %19, %18 : vector<8x1xf32>
    %21 = math.exp %20 : vector<8x1xf32>
    %cst_7 = arith.constant 1.000000e+00 : f32
    %22 = vector.broadcast %cst_7 : f32 to vector<8x1xf32>
    %23 = arith.subf %22, %21 : vector<8x1xf32>
    %24 = arith.mulf %23, %23 : vector<8x1xf32>
    %25 = arith.mulf %24, %18 : vector<8x1xf32>
    %c8_i32 = arith.constant 8 : i32
    %26 = arith.muli %arg0, %c8_i32 : i32
    %27 = tpu.iota {dimensions = array<i32: 0>} : vector<8x1xi32>
    %28 = vector.broadcast %26 : i32 to vector<8x1xi32>
    %29 = arith.addi %28, %27 : vector<8x1xi32>
    %c20_i32 = arith.constant 20 : i32
    %30 = vector.broadcast %c20_i32 : i32 to vector<8x1xi32>
    %31 = arith.cmpi slt, %29, %30 : vector<8x1xi32>
    %cst_8 = arith.constant 0.000000e+00 : f32
    %32 = vector.broadcast %cst_8 : f32 to vector<8x1xf32>
    %33 = arith.select %31, %25, %32 : vector<8x1xi1>, vector<8x1xf32>
    %34 = vector.shape_cast %33 : vector<8x1xf32> to vector<1x8x1xf32>
    %cst_9 = arith.constant dense<0.000000e+00> : vector<1xf32>
    %35 = vector.multi_reduction <add>, %34, %cst_9 [1, 2] : vector<1x8x1xf32> to vector<1xf32>
    %36 = vector.shape_cast %35 : vector<1xf32> to vector<1x1x1xf32>
    %37 = vector.extract %36[0, 0, 0] : f32 from vector<1x1x1xf32>
    %cst_10 = arith.constant 1.250000e-02 : f32
    %38 = arith.mulf %37, %cst_10 : f32
    %39 = tpu.iota {dimensions = array<i32: 0>} : vector<8x128xi32>
    %40 = tpu.iota {dimensions = array<i32: 1>} : vector<8x128xi32>
    %c0_i32 = arith.constant 0 : i32
    %41 = vector.broadcast %c0_i32 : i32 to vector<8x128xi32>
    %42 = arith.cmpi eq, %39, %41 : vector<8x128xi32>
    %c0_i32_11 = arith.constant 0 : i32
    %43 = vector.broadcast %c0_i32_11 : i32 to vector<8x128xi32>
    %44 = arith.cmpi eq, %40, %43 : vector<8x128xi32>
    %45 = arith.andi %42, %44 : vector<8x128xi1>
    %cst_12 = arith.constant 0.000000e+00 : f32
    %46 = vector.broadcast %38 : f32 to vector<8x128xf32>
    %47 = vector.broadcast %cst_12 : f32 to vector<8x128xf32>
    %48 = arith.select %45, %46, %47 : vector<8x128xi1>, vector<8x128xf32>
    %c0_13 = arith.constant 0 : index
    %c0_14 = arith.constant 0 : index
    %49 = vector.load %arg3[%c0_13, %c0_14] : memref<8x128xf32, #tpu.memory_space<vmem>>, vector<8x128xf32>
    tpu.vector_store %arg3[%c0_13, %c0_14], %48 {strides = array<i32>} : memref<8x128xf32, #tpu.memory_space<vmem>>, vector<8x128xf32>,
    return
  }
  func.func @transform_0(%arg0: i32) -> (i32, i32) {
    %c0_i32 = arith.constant 0 : i32
    %c0_i32_0 = arith.constant 0 : i32
    return %arg0, %c0_i32 : i32, i32
  }
  func.func @transform_1(%arg0: i32) -> (i32, i32) {
    %c0_i32 = arith.constant 0 : i32
    %c0_i32_0 = arith.constant 0 : i32
    return %arg0, %c0_i32 : i32, i32
  }
  func.func @transform_2(%arg0: i32) -> (i32, i32) {
    %c0_i32 = arith.constant 0 : i32
    %c0_i32_0 = arith.constant 0 : i32
    return %arg0, %c0_i32 : i32, i32
  }
}

</mosaic_0001>

<bundles_post_ra>
// kernel: tpu_custom_call.1
= control target key start
LH: loop header
LB: loop body
LE: loop exit
PB: predicated region body
PF: predicated region fallthrough
CT: control target
= control target key end

     0   :  { %7 = vsyncpa [#allocation3], 0  ;;  %s547_s0 = inlined_call_operand.vmem [shape: f32[20,32], index: 0, kind: input, shape index: {}]   ;;  %s548_s1 = inlined_call_operand.vmem [shape: s32[20,1], index: 1, kind: input, shape index: {}]   ;;  %s549_s2 = inlined_call_operand.hbm [shape: f32[24,128], index: 2, kind: output, shape index: {}]  }
   0x1   :  { %9 = vsyncpa [#allocation3 + $0x1], 0  ;;  %s440_s9 = smov 0   ;;  %s442_s10 = smov 0  }
   0x2   :  { %s444_s11 = smov 0   ;;  %s446_s12 = smov 0  }
   0x3 LB: > { %s461_s13 = sadd.s32 4294967295, %s421_s12   ;;  %s298_s14 = sadd.s32 4294967294, %s421_s12   ;;  %s421_s12 = sphi %s446_s12, %s555_s12   ;;  %s417_s11 = sphi %s444_s11, %s554_s11   ;;  %s413_s10 = sphi %s442_s10, %s553_s10   ;;  %s409_s9 = sphi %s440_s9, %s552_s9  }
   0x4   : > { %s465_s15 = sadd.s32 1, %s421_s12   ;;  %s74_s16 = sadd.s32 1, %s417_s11 }
   0x5   : > { %s71_s17 = ssub.s32 %s421_s12, %s465_s15  ;;  %p84_p0 = scmp.ne.s32.totalorder %s417_s11, %s413_s10 }
   0x6   : > { %p72_p1 = scmp.eq.s32.totalorder %s71_s17, 0  ;;  %p85_p2 = scmp.eq.s32.totalorder %s461_s13, 2 }
   0x7   : > { %p90_p3 = scmp.ne.s32.totalorder %s413_s10, %s409_s9  ;;  %p91_p4 = scmp.eq.s32.totalorder %s298_s14, 2 }
   0x8   : > { %s476_s18 = scalar_select %p72_p1, %s417_s11, %s74_s16  }
   0x9   : > { %p478_p5 = por %p85_p2, %p84_p0  ;;  %p482_p6 = por %p91_p4, %p90_p3 }
   0xa   : > { %p301_p7 = scmp.ge.s32.totalorder %s421_s12, 1  ;;  %p123_p8 = scmp.lt.s32.totalorder %s421_s12, 4 }
   0xc   : > { %p124_p9 = pnand %p301_p7, %p123_p8 }
   0xd   : > { %p148_p10 = scmp.lt.s32.totalorder (!%p124_p9), %s461_s13, 2  ;;  %v423_v0 = vmov (!%p124_p9), 0   ;;  %vm158_vm0 = vcmask (!%p124_p9), 261120   ;;  %v168_v7 = vlaneseq (!%p124_p9)  ;;  %s305_s29 = sshll.u32 (!%p124_p9), %s461_s13, 3  ;;  %vm195_vm3 = vcmask (!%p124_p9), 7168  }
   0xe   : > { %127 = sbr.rel (%p124_p9) target bundleno = 587 (0x24b), region = 28  ;;  %352 = vset.pattern.permute.xlu0 (!%p124_p9), %v423_v0  ;;  %v191_v23 = vstv (!%p124_p9), %s305_s29  ;;  %s145_s30 = sand.u32 (!%p124_p9), 1, %s413_s10  }
   0xf   : > { %v169_v8 = vand.u32 (!%p124_p9), 127, %v168_v7  ;;  %v190_v22 = vshrl.u32 (!%p124_p9), %v168_v7, 7  ;;  %s302_s3 = sshll.u32 (!%p124_p9), %s145_s30, 3  ;;  %s307_s4 = sshll.u32 (!%p124_p9), %s461_s13, 7 }
  0x10   : > { %s147_s6 = scalar_lea.vmem (!%p124_p9), [#allocation2], %s302_s3  ;;  %s505_s17 = scalar_lea.hbm (!%p124_p9), %s549_s2, %s307_s4 }
  0x11   : > { %v192_v25 = vadd.s32 (!%p124_p9), %v191_v23, %v190_v22  ;;  %vm207_vm4 = vcmp.eq.s32.totalorder (!%p124_p9), %v190_v22, 0  ;;  %vm208_vm5 = vcmp.eq.s32.totalorder (!%p124_p9), %v169_v8, 0  ;;  %s227_s7 = sshll.u32 (!%p124_p9), %s147_s6, 4  ;;  %s507_s7 = int_to_ptr.vmem [resolvable:$true] %s227_s7 }
  0x12   : > { %vm209_vm6 = vmand (!%p124_p9), %vm207_vm4, %vm208_vm5 }
  0x13   : > { %vm193_vm2 = vcmp.lt.s32.totalorder (!%p124_p9), %v192_v25, 20 }
  0x15   : > { %s149_s21 = scalar_select %p148_p10, %s461_s13, 2 }
  0x16   : > { %s359_s13 = scalar_lea.vmem %s507_s7, 128 }
  0x17   : > { %s303_s22 = sshll.u32 %s149_s21, 3  ;;  %s214_s21 = scalar_lea.sflag [#allocation3], %s145_s30 }
  0x18   : > { %s151_s25 = scalar_lea.vmem %s547_s0, %s303_s22  ;;  %s155_s28 = scalar_lea.vmem %s548_s1, %s303_s22 }
  0x19   : > { %v156_v1 = vld [vmem:[%s151_s25] sm:$0xff]  ;;  %p360_p11 = scmp.ne.s32.totalorder %s507_s7, %s359_s13  ;;  %s424_s22 = smov [#allocation2]  }
  0x1a   : > { %v159_v2 = vsel %vm158_vm0, %v156_v1, -inf  ;;  %v157_v3 = vld [vmem:[%s155_s28] sm:$0xff]  ;;  %s363_s23 = sshll.u32 %s424_s22, 4  ;;  %s364_s23 = int_to_ptr.vmem [resolvable:$false] %s363_s23 }
  0x1b   : > { %160 = vmax.xlane.f32.xlu0 %v159_v2  ;;  %p361_p12 = pnand %p360_p11, %p478_p5  ;;  %s365_s24 = scalar_lea.vmem %s364_s23, 256 }
  0x1c   : > { %p366_p0 = scmp.lt.s32.totalorder %s507_s7, %s364_s23  ;;  %p367_p1 = scmp.lt.s32.totalorder %s365_s24, %s359_s13 }
  0x1d   : > { %p362_p13 = pneg %p361_p12 }
  0x1e   : > { %p368_p2 = por %p367_p1, %p366_p0 }
  0x20   : > { %p369_p3 = pnand %p368_p2, %p362_p13 }
  0x31   : > { %171 = vperm.xlu0 %352, %v157_v3  }
  0xa8   : > { %v161_v4 = vpop.xlane.xlu0 %160 }
  0xa9   : > { %v162_v5 = vsub.f32 %v156_v1, %v161_v4 }
  0xab   : > { %v163_v6 = vmul.f32 1.442695, %v162_v5 }
  0xad   : > { %353 = vpow2.f32 %v163_v6 }
  0xb0   : > { %v172_v9 = vpop.permute.xlu0 %171 }
  0xb1   : > { %vm173_vm1 = vcmp.eq.s32.totalorder %v169_v8, %v172_v9 }
  0xb2   : > { %v174_v11 = vsel %vm173_vm1, %v156_v1, 0.0 }
  0xb3   : > { %v175_v13 = vsel %vm158_vm0, %v174_v11, 0.0 }
  0xb7   : > { %v354_v10 = vpop.eup %353 }
  0xb8   : > { %v165_v12 = vsel %vm158_vm0, %v354_v10, 0.0 }
  0xb9   : > { %166 = vadd.xlane.f32.xlu1 %v165_v12 }
  0xbd   : > { %176 = vadd.xlane.f32.xlu1 %v175_v13 }
 0x146   : > { %v167_v14 = vpop.xlane.xlu1 %166 }
 0x147   : > { %355 = vlog2.f32 %v167_v14 }
 0x14a   : > { %v177_v15 = vpop.xlane.xlu1 %176 }
 0x14b   : > { %v178_v18 = vsub.f32 %v161_v4, %v177_v15 }
 0x151   : > { %v356_v16 = vpop.eup %355 }
 0x152   : > { %v180_v17 = vmul.f32 0.6931472, %v356_v16 }
 0x154   : > { %v181_v19 = vadd.f32 %v180_v17, %v178_v18 }
 0x156   : > { %v182_v20 = vsub.f32 0.0, %v181_v19 }
 0x158   : > { %v183_v21 = vmul.f32 1.442695, %v182_v20 }
 0x15a   : > { %357 = vpow2.f32 %v183_v21 }
 0x164   : > { %v358_v24 = vpop.eup %357 }
 0x165   : > { %v185_v26 = vsub.f32 1.0, %v358_v24 }
 0x167   : > { %v186_v27 = vmul.f32 %v185_v26, %v185_v26 }
 0x169   : > { %v187_v28 = vmul.f32 %v186_v27, %v181_v19 }
 0x16b   : > { %v194_v29 = vsel %vm193_vm2, %v187_v28, 0.0 }
 0x16c   : > { %v196_v30 = vsel %vm195_vm3, %v194_v29, 0.0 }
 0x16d   : > { %197 = vadd.xlane.f32.xlu1 %v196_v30 }
 0x1fa   : > { %v198_v31 = vpop.xlane.xlu1 %197 }
 0x1fb   : > { %v199_v32 = vrot.slane %v198_v31, 4 }
 0x1fd   : > { %v200_v33 = vadd.f32 %v199_v32, %v198_v31 }
 0x1ff   : > { %v201_v34 = vrot.slane %v200_v33, 2 }
 0x201   : > { %v202_v35 = vadd.f32 %v201_v34, %v200_v33 }
 0x203   : > { %v203_v36 = vrot.slane %v202_v35, 1 }
 0x205   : > { %v204_v37 = vadd.f32 %v203_v36, %v202_v35 }
 0x207   : > { %310 = vpush %v204_v37 }
 0x238   : > { %s311_s5 = spop %310 }
 0x239   : > { %s206_s8 = smul.f32 0.0125, %s311_s5 }
 0x23b   : > { %v210_v38 = vstv %s206_s8 }
 0x23c   : > { %v211_v39 = vsel %vm209_vm6, %v210_v38, 0.0 }
 0x23d   : > { %212 = vst [vmem:[%s147_s6] sm:$0xff] %v211_v39 }
 0x23e   : > { %372 = shalt.err (!%p369_p3)
}
 0x23f   : > { %s373_s25 = scalar_lea.hbm %s505_s17, 128  ;;  %s377_s28 = scalar_lea.hbm %s549_s2, 384 }
 0x240   : > { %p374_p4 = scmp.ne.s32.totalorder %s505_s17, %s373_s25  ;;  %p378_p9 = scmp.lt.u32.totalorder %s505_s17, %s549_s2 }
 0x241   : > { %p379_p10 = scmp.lt.u32.totalorder %s377_s28, %s373_s25  ;;  %p381_p12 = scmp.lt.u32.totalorder %s373_s25, %s505_s17 }
 0x242   : > { %p375_p7 = pnand %p374_p4, %p478_p5 }
 0x243   : > { %p380_p11 = por %p379_p10, %p378_p9 }
 0x244   : > { %p376_p8 = pneg %p375_p7 }
 0x245   : > { %p382_p13 = por %p381_p12, %p380_p11 }
 0x247   : > { %p383_p0 = pnand %p382_p13, %p376_p8 }
 0x249   : > { %386 = shalt.err (!%p383_p0)
}
 0x24a   : > { %312 = dma.vmem_to_hbm [thread:$0]  (%p478_p5), %s507_s7, 128, %s505_s17, %s214_s21  }
 0x24b PF: > { %p318_p1 = scmp.ge.s32.totalorder %s421_s12, 2  ;;  %s239_s3 = sand.u32 1, %s409_s9  }
 0x24c   : > { %s240_s4 = scalar_lea.sflag [#allocation3], %s239_s3 }
 0x24d   : > { %p315_p2 = pnand %p318_p1, %p482_p6 }
 0x24f   : > { %404 = dma.done.wait (!%p315_p2), %s240_s4, 128  }
 0x250   : > { %406 = vsyncadd (!%p315_p2), %s240_s4, 4294967168  ;;  %p12_p3 = scmp.ge.s32.totalorder %s465_s15, 5   ;;  %s552_s9 = smov %s413_s10 }
 0x251   : > { %s553_s10 = smov %s417_s11  ;;  %s554_s11 = smov %s476_s18 }
 0x252   : > { %s555_s12 = smov %s465_s15  ;;  %14 = sbr.rel (!%p12_p3) target bundleno = 3 (0x3), region = 66 }
 0x259   :  { %245 = vsyncpa [#allocation3], 1 }
 0x25a   :  { %247 = vsyncpa [#allocation3 + $0x1], 1 }

</bundles_post_ra>
